<compile_context>
chip_gen: v7x
topology: tpu7x:2x2x1
jax: 0.10.0
libtpu: 0.0.40
codegen_flags: <defaults>
</compile_context>

<pallas_src>
import jax
import jax.numpy as jnp
from jax.experimental import pallas as pl
from jax.experimental.pallas import tpu as pltpu


def _global_softmax_kernel(x_ref, o_ref):
    # Whole (rows, 128) slab lives in one VMEM buffer (tiny input).
    exp_x = jnp.exp(x_ref[...])                    # EUP transcendental
    exp_sum = jnp.sum(exp_x, keepdims=True)        # (1,1) — stays on vector path
    inv = pl.reciprocal(exp_sum, approx=False)     # exact 1/x to hold 1e-6 tol
    o_ref[...] = exp_x * inv                       # broadcast multiply (VPU)


@jax.jit
def global_softmax(x):
    """Softmax over all elements of x, matching the PyTorch module.

    One traced region: the reshapes are metadata-only for contiguous f32, so
    the only real work is the single pallas_call (one DMA in, one DMA out).
    """
    orig_shape = x.shape
    n = x.size
    lanes = 128
    if n % lanes:
        # TODO(synk): padding would perturb the global exp-sum (exp(0)=1 per
        # pad element) unless pads are set to -inf pre-exp; the shapes used
        # here are always multiples of 128.
        raise ValueError("input size must be a multiple of 128 for this kernel")
    x2d = x.reshape(n // lanes, lanes)             # lane-dense 2D slab

    out2d = pl.pallas_call(
        _global_softmax_kernel,
        out_shape=jax.ShapeDtypeStruct(x2d.shape, x2d.dtype),
        # No grid: whole-array VMEM specs -> one DMA in, one DMA out.
        in_specs=[pl.BlockSpec(memory_space=pltpu.MemorySpace.VMEM)],
        out_specs=pl.BlockSpec(memory_space=pltpu.MemorySpace.VMEM),
    )(x2d)

    return out2d.reshape(orig_shape)


if __name__ == "__main__":
    key = jax.random.PRNGKey(0)
    # NCHW input, consistent with a conv-style module context.
    x = jax.random.normal(key, (2, 4, 16, 16), dtype=jnp.float32)

    out = global_softmax(x)
    out = jax.block_until_ready(out)

    # Reference check in plain JAX (same un-stabilized semantics).
    ref = jnp.exp(x) / jnp.sum(jnp.exp(x))
    assert out.shape == x.shape and out.dtype == x.dtype
    assert jnp.allclose(out, ref, atol=1e-6, rtol=1e-6)
    # Global softmax sums to 1 over the whole tensor.
    assert jnp.allclose(jnp.sum(out), 1.0, atol=1e-5)

    print("KERNEL_OK")
</pallas_src>

<mosaic_0001>
module attributes {stable_mosaic.version = 11 : i64} {
  func.func @_global_softmax_kernel(%arg0: memref<16x128xf32, #tpu.memory_space<vmem>>, %arg1: memref<16x128xf32, #tpu.memory_space<vmem>>) attributes {dimension_semantics = [], scalar_prefetch = 0 : i64, scratch_operands = 0 : i64, tpu.core_type = #tpu.core_type<tc>} {
    %c0 = arith.constant 0 : index
    %c0_0 = arith.constant 0 : index
    %0 = vector.load %arg0[%c0, %c0_0] : memref<16x128xf32, #tpu.memory_space<vmem>>, vector<16x128xf32>
    %1 = math.exp %0 : vector<16x128xf32>
    %2 = vector.shape_cast %1 : vector<16x128xf32> to vector<1x16x128xf32>
    %cst = arith.constant dense<0.000000e+00> : vector<1xf32>
    %3 = vector.multi_reduction <add>, %2, %cst [1, 2] : vector<1x16x128xf32> to vector<1xf32>
    %4 = vector.shape_cast %3 : vector<1xf32> to vector<1x1x1xf32>
    %5 = vector.extract %4[0, 0, 0] : f32 from vector<1x1x1xf32>
    %6 = vector.broadcast %5 : f32 to vector<1x1xf32>
    %7 = tpu.reciprocal %6 : vector<1x1xf32> -> vector<1x1xf32>
    %8 = vector.broadcast %7 : vector<1x1xf32> to vector<16x128xf32>
    %9 = arith.mulf %1, %8 : vector<16x128xf32>
    %c0_1 = arith.constant 0 : index
    %c0_2 = arith.constant 0 : index
    %10 = vector.load %arg1[%c0_1, %c0_2] : memref<16x128xf32, #tpu.memory_space<vmem>>, vector<16x128xf32>
    tpu.vector_store %arg1[%c0_1, %c0_2], %9 {strides = array<i32>} : memref<16x128xf32, #tpu.memory_space<vmem>>, vector<16x128xf32>,
    return
  }
}

</mosaic_0001>

<bundles_post_ra>
// kernel: global_softmax.1
= control target key start
LH: loop header
LB: loop body
LE: loop exit
PB: predicated region body
PF: predicated region fallthrough
CT: control target
= control target key end

     0   :  { %s64_s0 = inlined_call_operand.vmem [shape: f32[16,128], index: 0, kind: input, shape index: {}]   ;;  %s65_s1 = inlined_call_operand.vmem [shape: f32[16,128], index: 1, kind: output, shape index: {}]  }
   0x1   :  { %v8_v0 = vld [vmem:[%s64_s0] sm:$0xff]  ;;  %v9_v1 = vld [vmem:[%s64_s0 + $0x8] sm:$0xff] }
   0x2   :  { %v10_v2 = vmul.f32 1.442695, %v8_v0  ;;  %v12_v3 = vmul.f32 1.442695, %v9_v1 }
   0x4   :  { %36 = vpow2.f32 %v10_v2 }
   0x5   :  { %38 = vpow2.f32 %v12_v3 }
   0xe   :  { %v37_v4 = vpop.eup %36 }
   0xf   :  { %v39_v5 = vpop.eup %38 }
  0x10   :  { %v14_v6 = vadd.f32 %v39_v5, %v37_v4 }
  0x12   :  { %15 = vadd.xlane.f32.xlu0 %v14_v6 }
  0x9f   :  { %v16_v7 = vpop.xlane.xlu0 %15 }
  0xa0   :  { %v17_v8 = vrot.slane %v16_v7, 4 }
  0xa2   :  { %v18_v9 = vadd.f32 %v17_v8, %v16_v7 }
  0xa4   :  { %v19_v10 = vrot.slane %v18_v9, 2 }
  0xa6   :  { %v20_v11 = vadd.f32 %v19_v10, %v18_v9 }
  0xa8   :  { %v21_v12 = vrot.slane %v20_v11, 1 }
  0xaa   :  { %v22_v13 = vadd.f32 %v21_v12, %v20_v11 }
  0xac   :  { %34 = vpush %v22_v13 }
  0xdd   :  { %s35_s10 = spop %34 }
  0xde   :  { %v24_v14 = vstv %s35_s10 }
  0xdf   :  { %40 = vrcp.f32 %v24_v14 }
  0xe9   :  { %v41_v15 = vpop.eup %40 }
  0xea   :  { %v26_v16 = vmul.f32 %v41_v15, %v37_v4  ;;  %v27_v17 = vmul.f32 %v41_v15, %v39_v5 }
  0xec   :  { %28 = vst [vmem:[%s65_s1] sm:$0xff] %v26_v16  ;;  %29 = vst [vmem:[%s65_s1 + $0x8] sm:$0xff] %v27_v17 }

</bundles_post_ra>
